<compile_context>
chip_gen: v6e
topology: v6e:2x2x1
jax: 0.10.0
libtpu: 0.0.40
codegen_flags: <defaults>
</compile_context>

<pallas_src>
import functools  # noqa: F401  (kept for parity with typical kernel wrappers)

import jax
import jax.numpy as jnp
from jax.experimental import pallas as pl
from jax.experimental.pallas import tpu as pltpu

# ---- constants copied from the PyTorch module -------------------------------
anchor_h = 19.15
anchor_w = 85.72
times_of_down_sampling = 5
field_of_grid_cell = 2 ** times_of_down_sampling   # 32
num_anchors = 3
theta_margin = 180.0 / num_anchors                 # 60.0

_COUT = num_anchors * 6      # 18 = [conf, cx, cy, w, h, theta] per anchor
_COUT_PAD = 24               # weight rows padded to a sublane multiple of 8
_LANE = 128
_VMEM_TILE_BUDGET = 12 * 1024 * 1024   # double-buffered in+out tile budget (v5e-safe)


# ---- Pallas kernel: 1x1-conv head (matmul) + fused anchor decode -------------
def detect_head_kernel(x_ref, w_ref, b_ref, coord_ref, dec_ref):
    """One (image, spatial-tile) step.

    x_ref:     (1, Cin, T)       bf16 activations (NCHW flattened to (Cin, H*W))
    w_ref:     (_COUT_PAD, Cin)  bf16 transposed 1x1-conv weight (rows 18..23 zero)
    b_ref:     (_COUT, 1)        f32 bias column
    coord_ref: (2, T)            f32 [grid-col ; grid-row] per lane of this tile
    dec_ref:   (1, _COUT, T)     f32 decoded rows, row r = anchor*6 + field,
                                 fields = [conf, cx, cy, w, h, theta]
    """
    f32 = jnp.float32

    # MXU: channels in sublanes, spatial (H*W) in lanes -> lane-dense stores.
    y = jnp.dot(w_ref[...], x_ref[0],
                preferred_element_type=f32)[:_COUT] + b_ref[...]       # (18, T)

    # Per-row decode constants on a tiny (18, 1) strip (compares only, no div/mod).
    chan = jax.lax.broadcasted_iota(jnp.int32, (_COUT, 1), 0)
    anchor_i = jnp.zeros_like(chan)
    for a in range(1, num_anchors):
        anchor_i = anchor_i + (chan >= 6 * a).astype(jnp.int32)
    field = chan - 6 * anchor_i
    use_exp = (field == 3) | (field == 4)                               # w, h rows
    c_exp = jnp.where(field == 3, anchor_w, anchor_h)
    scale = jnp.where(field == 5, theta_margin,
                      jnp.where(field == 0, 1.0, float(field_of_grid_cell)))
    sel_col = (field == 1).astype(f32)
    sel_row = (field == 2).astype(f32)
    base_c = jnp.where(field == 5, anchor_i.astype(f32), 0.0)

    # One EUP exp + one approx reciprocal:
    #   exp rows (w, h):       t = exp(y)   -> out = c_exp * t
    #   sigmoid rows (others): t = exp(-y)  -> sigmoid(y) = 1 / (1 + t)
    t = jnp.exp(jnp.where(use_exp, y, -y))
    sig = pl.reciprocal(1.0 + t, approx=True)

    coords = coord_ref[...]                                             # (2, T)
    base = base_c + sel_col * coords[0:1, :] + sel_row * coords[1:2, :]
    dec_ref[0] = jnp.where(use_exp, c_exp * t, (base + sig) * scale)


# ---- tiling helper ------------------------------------------------------------
def _spatial_tiling(hw, n_images, cin, cap_hw=8192):
    """Pick (tile_hw, hw_padded): lane-dense 128-multiple tiles (prefer 256),
    biggest that fits a ~12 MiB double-buffered VMEM budget, and keep >=4 total
    grid steps when possible (v7x runs 2 TensorCores over the 'parallel' axes)."""
    # Double-buffered bytes per lane: input bf16 (2*Cin) + output f32 (4*_COUT).
    per_lane_bytes = 2 * (2 * cin + 4 * _COUT)
    cap = min(cap_hw, max(_LANE, (_VMEM_TILE_BUDGET // per_lane_bytes) // _LANE * _LANE))

    hwp = ((hw + _LANE - 1) // _LANE) * _LANE      # pad H*W up to a lane multiple
    best128, best256 = _LANE, 0
    t = _LANE
    while t <= min(hwp, cap):
        if hwp % t == 0:
            best128 = t
            if t % 256 == 0:
                best256 = t
        t += _LANE
    tile = best256 or best128
    while (n_images * (hwp // tile) < 4 and tile > _LANE
           and (tile // 2) % _LANE == 0 and hwp % (tile // 2) == 0):
        tile //= 2
    return tile, hwp


# ---- wrapper: kernel-native decoded grid --------------------------------------
def decode_native(x_nchw, weight, bias, *, tile_hw=None):
    """Decoded grid in kernel-native layout: (N, 18, HW_pad) f32,
    row r = anchor*6 + field, fields = [conf, cx, cy, w, h, theta]."""
    N, Cin, H, W = x_nchw.shape
    HW = H * W
    if tile_hw is None:
        tile_hw, HWp = _spatial_tiling(HW, N, Cin)
    else:
        assert tile_hw % _LANE == 0, "tile_hw must be a multiple of 128"
        HWp = ((HW + tile_hw - 1) // tile_hw) * tile_hw

    # NCHW consumed directly as (N, Cin, H*W); spatial axis zero-padded to HWp so
    # stores stay unmasked full-width; bf16 halves input DMA (MXU accumulates f32).
    x = x_nchw.reshape(N, Cin, HW)
    if HWp != HW:
        x = jnp.pad(x, ((0, 0), (0, 0), (0, HWp - HW)))
    x = x.astype(jnp.bfloat16)

    w_pad = jnp.zeros((_COUT_PAD, Cin), jnp.bfloat16).at[:_COUT].set(
        weight.astype(jnp.bfloat16))
    b = bias.astype(jnp.float32).reshape(_COUT, 1)

    # Host-precomputed grid-cell coordinates: row 0 = col (w index), row 1 = row.
    hw_idx = jnp.arange(HWp, dtype=jnp.int32)
    coords = jnp.stack([(hw_idx % W).astype(jnp.float32),
                        (hw_idx // W).astype(jnp.float32)], axis=0)     # (2, HWp)

    dec = pl.pallas_call(
        detect_head_kernel,
        out_shape=jax.ShapeDtypeStruct((N, _COUT, HWp), jnp.float32),
        grid_spec=pltpu.PrefetchScalarGridSpec(
            num_scalar_prefetch=0,
            grid=(N, HWp // tile_hw),
            in_specs=[
                pl.BlockSpec((1, Cin, tile_hw), lambda n, s: (n, 0, s)),
                pl.BlockSpec((_COUT_PAD, Cin), lambda n, s: (0, 0)),
                pl.BlockSpec((_COUT, 1), lambda n, s: (0, 0)),
                pl.BlockSpec((2, tile_hw), lambda n, s: (0, s)),
            ],
            out_specs=pl.BlockSpec((1, _COUT, tile_hw), lambda n, s: (n, 0, s)),
        ),
        compiler_params=pltpu.CompilerParams(
            dimension_semantics=("parallel", "parallel")),
    )(x, w_pad, b, coords)
    return dec


# ---- test-only helper: kernel-native -> torch-ordered dense grid --------------
def native_to_dense(dec, H, W):
    """(N, 18, HWp) -> (N, H, W, A, 6) matching torch's permute(0,2,3,1) ordering.
    Test-only; the production detection path never materializes this."""
    N = dec.shape[0]
    HW = H * W
    d = dec[:, :, :HW].reshape(N, num_anchors, 6, HW)
    return jnp.transpose(d, (0, 3, 1, 2)).reshape(N, H, W, num_anchors, 6)


# ---- DetectMultiImage.forward --------------------------------------------------
def detect_multi_image(x_nchw, weight, bias, confidence_threshold, *, tile_hw=None):
    """Reproduces DetectMultiImage.forward: (K, 6) rows of [conf, cx, cy, w, h, theta]
    in torch's (n, h, w, anchor) row order — thresholded and gathered directly from
    the kernel-native layout (no dense transpose)."""
    N, Cin, H, W = x_nchw.shape
    HW = H * W
    dec = decode_native(x_nchw, weight, bias, tile_hw=tile_hw)   # (N, 18, HWp)
    HWp = dec.shape[-1]

    conf = dec[:, 0::6, :]                                       # (N, A, HWp)
    valid = (jnp.arange(HWp) < HW)[None, None, :]                # drop spatial pad
    mask = (conf >= confidence_threshold) & valid
    # torch order is (n, h, w, a) == (n, hw, a): anchors last before flattening.
    mask_flat = jnp.transpose(mask, (0, 2, 1)).reshape(-1)

    # TODO(synk): torch .nonzero()/boolean indexing is data-dependent-shape;
    # done eagerly in JAX glue (keep outside any jit boundary).
    flat_idx = jnp.nonzero(mask_flat)[0]                          # (K,)
    a_idx = flat_idx % num_anchors
    hw_i = (flat_idx // num_anchors) % HWp
    n_idx = flat_idx // (num_anchors * HWp)
    rows = a_idx[:, None] * 6 + jnp.arange(6, dtype=a_idx.dtype)[None, :]
    return dec[n_idx[:, None], rows, hw_i[:, None]]               # (K, 6)


# ---- pure-JAX reference (for the in-script correctness check) ------------------
def _reference_dense(x_nchw, weight, bias):
    """Torch-mimicking decode; head matmul at the kernel's bf16 input precision."""
    N, Cin, H, W = x_nchw.shape
    xr = x_nchw.astype(jnp.bfloat16).astype(jnp.float32)
    wr = weight.astype(jnp.bfloat16).astype(jnp.float32)
    out = jnp.einsum("oc,nchw->nhwo", wr, xr) + bias.astype(jnp.float32).reshape(-1)
    out = out.reshape(N, H, W, num_anchors, 6)
    col = jnp.arange(W, dtype=jnp.float32).reshape(1, 1, W, 1)
    row = jnp.arange(H, dtype=jnp.float32).reshape(1, H, 1, 1)
    anc = jnp.arange(num_anchors, dtype=jnp.float32).reshape(1, 1, 1, num_anchors)
    sig = jax.nn.sigmoid
    conf = sig(out[..., 0])
    cx = (col + sig(out[..., 1])) * field_of_grid_cell
    cy = (row + sig(out[..., 2])) * field_of_grid_cell
    ww = anchor_w * jnp.exp(out[..., 3])
    hh = anchor_h * jnp.exp(out[..., 4])
    th = (anc + sig(out[..., 5])) * theta_margin
    return jnp.stack([conf, cx, cy, ww, hh, th], axis=-1)


if __name__ == "__main__":
    key = jax.random.PRNGKey(0)
    Cout = num_anchors * 6

    # Case 1: 128-aligned spatial extent (multi-tile grid (2, 2)).
    # Case 2: non-aligned H*W (10*14 = 140) -> exercises spatial zero-padding.
    for case_idx, (N, Cin, H, W) in enumerate([(2, 4, 16, 16), (2, 4, 10, 14)]):
        ck = jax.random.fold_in(key, case_idx)
        kx, kw, kb = jax.random.split(ck, 3)
        x = jax.random.normal(kx, (N, Cin, H, W), dtype=jnp.float32)
        weight = 0.5 * jax.random.normal(kw, (Cout, Cin), dtype=jnp.float32)
        bias = 0.1 * jax.random.normal(kb, (Cout,), dtype=jnp.float32)

        dec = decode_native(x, weight, bias)                 # (N, 18, HWp)
        jax.block_until_ready(dec)

        dense = native_to_dense(dec, H, W)                   # test-only view
        ref = _reference_dense(x, weight, bias)
        assert dense.shape == (N, H, W, num_anchors, 6)
        assert bool(jnp.allclose(dense, ref, rtol=1e-2, atol=1e-2)), \
            f"case {case_idx}: decoded grid mismatch vs pure-JAX reference"

        det = detect_multi_image(x, weight, bias, confidence_threshold=0.5)
        jax.block_until_ready(det)
        assert det.ndim == 2 and det.shape[1] == 6

        # Reference detections via the torch-style permute/reshape/boolean-index
        # path, built from the SAME decoded values -> checks row order + gather glue.
        ref_mask = dense[..., 0] >= 0.5
        ref_det = dense.reshape(-1, 6)[ref_mask.reshape(-1)]
        assert det.shape == ref_det.shape, \
            f"case {case_idx}: detection count mismatch"
        assert bool(jnp.allclose(det, ref_det)), \
            f"case {case_idx}: detection rows/order mismatch"

    print("KERNEL_OK")
</pallas_src>

<mosaic_0001>
module attributes {stable_mosaic.version = 11 : i64} {
  func.func @detect_head_kernel(%arg0: i32, %arg1: i32, %arg2: memref<1x4x128xbf16, #tpu.memory_space<vmem>>, %arg3: memref<24x4xbf16, #tpu.memory_space<vmem>>, %arg4: memref<18x1xf32, #tpu.memory_space<vmem>>, %arg5: memref<2x128xf32, #tpu.memory_space<vmem>>, %arg6: memref<1x18x128xf32, #tpu.memory_space<vmem>>) attributes {dimension_semantics = [#tpu.dimension_semantics<parallel>, #tpu.dimension_semantics<parallel>], iteration_bounds = array<i64: 2, 2>, scalar_prefetch = 0 : i64, scratch_operands = 0 : i64, tpu.core_type = #tpu.core_type<tc>, window_params = [{transform_indices = @transform_0, window_bounds = array<i64: 1, 4, 128>}, {pipeline_mode = #tpu.pipeline_mode<synchronous>, transform_indices = @transform_1, window_bounds = array<i64: 24, 4>}, {pipeline_mode = #tpu.pipeline_mode<synchronous>, transform_indices = @transform_2, window_bounds = array<i64: 18, 1>}, {transform_indices = @transform_3, window_bounds = array<i64: 2, 128>}, {transform_indices = @transform_4, window_bounds = array<i64: 1, 18, 128>}]} {
    %c0 = arith.constant 0 : index
    %c0_0 = arith.constant 0 : index
    %0 = vector.load %arg3[%c0, %c0_0] : memref<24x4xbf16, #tpu.memory_space<vmem>>, vector<24x4xbf16>
    %c0_1 = arith.constant 0 : index
    %c0_2 = arith.constant 0 : index
    %c0_3 = arith.constant 0 : index
    %1 = vector.load %arg2[%c0_1, %c0_2, %c0_3] : memref<1x4x128xbf16, #tpu.memory_space<vmem>>, vector<1x4x128xbf16>
    %2 = vector.shape_cast %1 : vector<1x4x128xbf16> to vector<4x128xbf16>
    %cst = arith.constant dense<0.000000e+00> : vector<24x128xf32>
    %3 = tpu.matmul %0, %2, %cst {dimension_numbers = #tpu.dot_dimension_numbers<[1], [0], [0], [1], [0, 0, 1, 1], [], []>} : vector<24x4xbf16>, vector<4x128xbf16>, vector<24x128xf32> -> vector<24x128xf32>
    %4 = vector.extract_strided_slice %3 {offsets = [0, 0], sizes = [18, 128], strides = [1, 1]} : vector<24x128xf32> to vector<18x128xf32>
    %c0_4 = arith.constant 0 : index
    %c0_5 = arith.constant 0 : index
    %5 = vector.load %arg4[%c0_4, %c0_5] : memref<18x1xf32, #tpu.memory_space<vmem>>, vector<18x1xf32>
    %6 = vector.broadcast %5 : vector<18x1xf32> to vector<18x128xf32>
    %7 = arith.addf %4, %6 : vector<18x128xf32>
    %8 = tpu.iota {dimensions = array<i32: 0>} : vector<18x1xi32>
    %c0_i32 = arith.constant 0 : i32
    %9 = vector.broadcast %c0_i32 : i32 to vector<18x1xi32>
    %c6_i32 = arith.constant 6 : i32
    %10 = vector.broadcast %c6_i32 : i32 to vector<18x1xi32>
    %11 = arith.cmpi sge, %8, %10 : vector<18x1xi32>
    %12 = arith.extui %11 : vector<18x1xi1> to vector<18x1xi32>
    %13 = arith.addi %9, %12 : vector<18x1xi32>
    %c12_i32 = arith.constant 12 : i32
    %14 = vector.broadcast %c12_i32 : i32 to vector<18x1xi32>
    %15 = arith.cmpi sge, %8, %14 : vector<18x1xi32>
    %16 = arith.extui %15 : vector<18x1xi1> to vector<18x1xi32>
    %17 = arith.addi %13, %16 : vector<18x1xi32>
    %c6_i32_6 = arith.constant 6 : i32
    %18 = vector.broadcast %c6_i32_6 : i32 to vector<18x1xi32>
    %19 = arith.muli %18, %17 : vector<18x1xi32>
    %20 = arith.subi %8, %19 : vector<18x1xi32>
    %c3_i32 = arith.constant 3 : i32
    %21 = vector.broadcast %c3_i32 : i32 to vector<18x1xi32>
    %22 = arith.cmpi eq, %20, %21 : vector<18x1xi32>
    %c4_i32 = arith.constant 4 : i32
    %23 = vector.broadcast %c4_i32 : i32 to vector<18x1xi32>
    %24 = arith.cmpi eq, %20, %23 : vector<18x1xi32>
    %25 = arith.ori %22, %24 : vector<18x1xi1>
    %c3_i32_7 = arith.constant 3 : i32
    %26 = vector.broadcast %c3_i32_7 : i32 to vector<18x1xi32>
    %27 = arith.cmpi eq, %20, %26 : vector<18x1xi32>
    %cst_8 = arith.constant 8.572000e+01 : f32
    %cst_9 = arith.constant 1.915000e+01 : f32
    %28 = vector.broadcast %cst_8 : f32 to vector<18x1xf32>
    %29 = vector.broadcast %cst_9 : f32 to vector<18x1xf32>
    %30 = arith.select %27, %28, %29 : vector<18x1xi1>, vector<18x1xf32>
    %c5_i32 = arith.constant 5 : i32
    %31 = vector.broadcast %c5_i32 : i32 to vector<18x1xi32>
    %32 = arith.cmpi eq, %20, %31 : vector<18x1xi32>
    %c0_i32_10 = arith.constant 0 : i32
    %33 = vector.broadcast %c0_i32_10 : i32 to vector<18x1xi32>
    %34 = arith.cmpi eq, %20, %33 : vector<18x1xi32>
    %cst_11 = arith.constant 1.000000e+00 : f32
    %cst_12 = arith.constant 3.200000e+01 : f32
    %35 = vector.broadcast %cst_11 : f32 to vector<18x1xf32>
    %36 = vector.broadcast %cst_12 : f32 to vector<18x1xf32>
    %37 = arith.select %34, %35, %36 : vector<18x1xi1>, vector<18x1xf32>
    %cst_13 = arith.constant 6.000000e+01 : f32
    %38 = vector.broadcast %cst_13 : f32 to vector<18x1xf32>
    %39 = arith.select %32, %38, %37 : vector<18x1xi1>, vector<18x1xf32>
    %c1_i32 = arith.constant 1 : i32
    %40 = vector.broadcast %c1_i32 : i32 to vector<18x1xi32>
    %41 = arith.cmpi eq, %20, %40 : vector<18x1xi32>
    %42 = arith.extui %41 : vector<18x1xi1> to vector<18x1xi32>
    %43 = arith.sitofp %42 : vector<18x1xi32> to vector<18x1xf32>
    %c2_i32 = arith.constant 2 : i32
    %44 = vector.broadcast %c2_i32 : i32 to vector<18x1xi32>
    %45 = arith.cmpi eq, %20, %44 : vector<18x1xi32>
    %46 = arith.extui %45 : vector<18x1xi1> to vector<18x1xi32>
    %47 = arith.sitofp %46 : vector<18x1xi32> to vector<18x1xf32>
    %c5_i32_14 = arith.constant 5 : i32
    %48 = vector.broadcast %c5_i32_14 : i32 to vector<18x1xi32>
    %49 = arith.cmpi eq, %20, %48 : vector<18x1xi32>
    %50 = arith.sitofp %17 : vector<18x1xi32> to vector<18x1xf32>
    %cst_15 = arith.constant 0.000000e+00 : f32
    %51 = vector.broadcast %cst_15 : f32 to vector<18x1xf32>
    %52 = arith.select %49, %50, %51 : vector<18x1xi1>, vector<18x1xf32>
    %cst_16 = arith.constant 0.000000e+00 : f32
    %53 = vector.broadcast %cst_16 : f32 to vector<18x128xf32>
    %54 = arith.subf %53, %7 : vector<18x128xf32>
    %55 = vector.shape_cast %25 : vector<18x1xi1> to vector<18x1xi1>
    %56 = vector.broadcast %55 : vector<18x1xi1> to vector<18x128xi1>
    %57 = arith.select %56, %7, %54 : vector<18x128xi1>, vector<18x128xf32>
    %58 = math.exp %57 : vector<18x128xf32>
    %cst_17 = arith.constant 1.000000e+00 : f32
    %59 = vector.broadcast %cst_17 : f32 to vector<18x128xf32>
    %60 = arith.addf %59, %58 : vector<18x128xf32>
    %61 = tpu.reciprocal %60 {approx = true} : vector<18x128xf32> -> vector<18x128xf32>
    %c0_18 = arith.constant 0 : index
    %c0_19 = arith.constant 0 : index
    %62 = vector.load %arg5[%c0_18, %c0_19] : memref<2x128xf32, #tpu.memory_space<vmem>>, vector<2x128xf32>
    %63 = vector.extract_strided_slice %62 {offsets = [0, 0], sizes = [1, 128], strides = [1, 1]} : vector<2x128xf32> to vector<1x128xf32>
    %64 = vector.broadcast %43 : vector<18x1xf32> to vector<18x128xf32>
    %65 = vector.broadcast %63 : vector<1x128xf32> to vector<18x128xf32>
    %66 = arith.mulf %64, %65 : vector<18x128xf32>
    %67 = vector.broadcast %52 : vector<18x1xf32> to vector<18x128xf32>
    %68 = arith.addf %67, %66 : vector<18x128xf32>
    %69 = vector.extract_strided_slice %62 {offsets = [1, 0], sizes = [1, 128], strides = [1, 1]} : vector<2x128xf32> to vector<1x128xf32>
    %70 = vector.broadcast %47 : vector<18x1xf32> to vector<18x128xf32>
    %71 = vector.broadcast %69 : vector<1x128xf32> to vector<18x128xf32>
    %72 = arith.mulf %70, %71 : vector<18x128xf32>
    %73 = arith.addf %68, %72 : vector<18x128xf32>
    %74 = vector.broadcast %30 : vector<18x1xf32> to vector<18x128xf32>
    %75 = arith.mulf %74, %58 : vector<18x128xf32>
    %76 = arith.addf %73, %61 : vector<18x128xf32>
    %77 = vector.broadcast %39 : vector<18x1xf32> to vector<18x128xf32>
    %78 = arith.mulf %76, %77 : vector<18x128xf32>
    %79 = vector.shape_cast %25 : vector<18x1xi1> to vector<18x1xi1>
    %80 = vector.broadcast %79 : vector<18x1xi1> to vector<18x128xi1>
    %81 = arith.select %80, %75, %78 : vector<18x128xi1>, vector<18x128xf32>
    %c0_20 = arith.constant 0 : index
    %c0_21 = arith.constant 0 : index
    %c0_22 = arith.constant 0 : index
    %82 = vector.load %arg6[%c0_20, %c0_21, %c0_22] : memref<1x18x128xf32, #tpu.memory_space<vmem>>, vector<1x18x128xf32>
    %83 = vector.shape_cast %82 : vector<1x18x128xf32> to vector<18x128xf32>
    %84 = vector.shape_cast %81 : vector<18x128xf32> to vector<1x18x128xf32>
    tpu.vector_store %arg6[%c0_20, %c0_21, %c0_22], %84 {strides = array<i32>} : memref<1x18x128xf32, #tpu.memory_space<vmem>>, vector<1x18x128xf32>,
    return
  }
  func.func @transform_0(%arg0: i32, %arg1: i32) -> (i32, i32, i32) {
    %c0_i32 = arith.constant 0 : i32
    %c0_i32_0 = arith.constant 0 : i32
    return %arg0, %c0_i32, %arg1 : i32, i32, i32
  }
  func.func @transform_1(%arg0: i32, %arg1: i32) -> (i32, i32) {
    %c0_i32 = arith.constant 0 : i32
    %c0_i32_0 = arith.constant 0 : i32
    %c0_i32_1 = arith.constant 0 : i32
    return %c0_i32, %c0_i32_0 : i32, i32
  }
  func.func @transform_2(%arg0: i32, %arg1: i32) -> (i32, i32) {
    %c0_i32 = arith.constant 0 : i32
    %c0_i32_0 = arith.constant 0 : i32
    %c0_i32_1 = arith.constant 0 : i32
    return %c0_i32, %c0_i32_0 : i32, i32
  }
  func.func @transform_3(%arg0: i32, %arg1: i32) -> (i32, i32) {
    %c0_i32 = arith.constant 0 : i32
    %c0_i32_0 = arith.constant 0 : i32
    return %c0_i32, %arg1 : i32, i32
  }
  func.func @transform_4(%arg0: i32, %arg1: i32) -> (i32, i32, i32) {
    %c0_i32 = arith.constant 0 : i32
    %c0_i32_0 = arith.constant 0 : i32
    return %arg0, %c0_i32, %arg1 : i32, i32, i32
  }
}

</mosaic_0001>

<bundles_post_ra>
// kernel: tpu_custom_call.1
= control target key start
LH: loop header
LB: loop body
LE: loop exit
PB: predicated region body
PF: predicated region fallthrough
CT: control target
= control target key end

     0   :  { %s788_s15 = smov 0   ;;  %s790_s16 = smov 0   ;;  %s979_s0 = inlined_call_operand.vmem [shape: bf16[2,4,256], index: 0, kind: input, shape index: {}]   ;;  %s980_s1 = inlined_call_operand.vmem [shape: bf16[24,4], index: 1, kind: input, shape index: {}]   ;;  %s981_s2 = inlined_call_operand.vmem [shape: f32[18,1], index: 2, kind: input, shape index: {}]   ;;  %s982_s3 = inlined_call_operand.vmem [shape: f32[2,256], index: 3, kind: input, shape index: {}]   ;;  %s983_s4 = inlined_call_operand.vmem [shape: f32[2,18,256], index: 4, kind: output, shape index: {}]  }
   0x1   :  { %s792_s17 = smov 0   ;;  %s794_s18 = smov 0  }
   0x2   :  { %s796_s19 = smov 0   ;;  %s798_s20 = smov 0  }
   0x3   :  { %s800_s21 = smov 0  }
   0x4 LB: > { %s23_s22 = sadd.s32 1, %s749_s19  ;;  %s26_s23 = sadd.s32 1, %s753_s20  ;;  %s757_s21 = sphi %s800_s21, %s14_s21   ;;  %s753_s20 = sphi %s798_s20, %s994_s20   ;;  %s749_s19 = sphi %s796_s19, %s993_s19   ;;  %s745_s18 = sphi %s794_s18, %s992_s18   ;;  %s741_s17 = sphi %s792_s17, %s991_s17   ;;  %s737_s16 = sphi %s790_s16, %s990_s16   ;;  %s733_s15 = sphi %s788_s15, %s989_s15  }
   0x5   : > { %p24_p0 = scmp.ge.s32.totalorder %s23_s22, 2  ;;  %s594_s24 = sadd.s32 4294967295, %s757_s21  }
   0x6   : > { %p141_p1 = scmp.ne.s32.totalorder %s737_s16, %s733_s15  ;;  %p142_p2 = scmp.eq.s32.totalorder %s594_s24, 3 }
   0x7   : > { %s996_s22 = smov (%p24_p0, %s23_s22), 0  ;;  %s998_s23 = smov (!%p24_p0, %s26_s23), %s753_s20 }
   0x8   : > { %s127_s25 = ssub.s32 %s749_s19, %s996_s22  ;;  %p28_p3 = scmp.ge.s32.totalorder %s998_s23, 2 }
   0x9   : > { %p598_p4 = scmp.ge.s32.totalorder %s757_s21, 1  ;;  %p834_p5 = por %p142_p2, %p141_p1 }
   0xa   : > { %p190_p6 = scmp.lt.s32.totalorder %s757_s21, 5  ;;  %s1000_s23 = smov (%p28_p3, %s998_s23), 0 }
   0xb   : > { %s126_s27 = ssub.s32 %s753_s20, %s1000_s23  ;;  %s131_s29 = sadd.s32 1, %s737_s16 }
   0xc   : > { %p191_p7 = pnand %p598_p4, %p190_p6  ;;  %s128_s28 = sor.u32 %s127_s25, %s126_s27 }
   0xd   : > { %p129_p8 = scmp.eq.s32.totalorder %s128_s28, 0  ;;  %p222_p9 = scmp.lt.s32.totalorder (!%p191_p7), %s745_s18, 1 }
   0xe   : > { %194 = sbr.rel (%p191_p7) target bundleno = 280 (0x118), region = 36  ;;  %p224_p10 = scmp.lt.s32.totalorder (!%p191_p7), %s741_s17, 1 }
   0xf   : > { %s845_s30 = scalar_select %p129_p8, %s737_s16, %s131_s29  }
  0x13   : > { %v689_v0 = vld [vmem:[%s980_s1] sm:$0xff]   ;;  %vm247_vm0 = vcmask 31744   ;;  %s223_s7 = scalar_select %p222_p9, %s745_s18, 1  ;;  %v759_v1 = vmov 0   ;;  %v308_v3 = vld [vmem:[%s981_s2 + $0x10] sm:$0x3]  ;;  %v327_v8 = vlaneseq }
  0x14   : > { %620 = vmatprep.mubr.msk.bf16.mxu0 %vm247_vm0, %v689_v0  ;;  %687 = vset.pattern.permute.xlu0 %v759_v1  ;;  %s855_s8 = scalar_select %p224_p10, %s741_s17, 1  ;;  %v306_v2 = vld [vmem:[%s981_s2] sm:$0xff]  ;;  %v307_v4 = vld [vmem:[%s981_s2 + $0x8] sm:$0xff]  ;;  %vm254_vm1 = vcmask 1041408   ;;  %v760_v20 = vmov 0.0  }
  0x15   : > { %688 = vset.pattern.permute.xlu1 %v759_v1  ;;  %s599_s13 = sshll.u32 %s223_s7, 1  ;;  %311 = vperm.xlu0 %687, %v306_v2   ;;  %v690_v7 = vld [vmem:[%s980_s1 + $0x8] ss:$0 sps:$4 sm:$0xff]   ;;  %v328_v9 = vshrl.u32 %v327_v8, 7 }
  0x16   : > { %321 = vperm.xlu1 %688, %v308_v3   ;;  %s227_s14 = sadd.s32 %s599_s13, %s855_s8  ;;  %s601_s9 = sshll.u32 %s855_s8, 1 }
  0x17   : > { %s600_s27 = sshll.u32 %s227_s14, 1  ;;  %v329_v10 = vadd.s32 8, %v328_v9  ;;  %vm331_vm2 = vcmp.ge.s32.totalorder %v328_v9, 6  ;;  %s233_s12 = scalar_lea.vmem %s982_s3, %s601_s9  ;;  %v427_v15 = vsub.s32 0, %v328_v9  ;;  %v437_v19 = vsub.s32 1, %v328_v9 }
  0x18   : > { %s229_s5 = scalar_lea.vmem %s979_s0, %s600_s27  ;;  %v334_v11 = vsel %vm331_vm2, 1, %v759_v1  ;;  %v424_v18 = vld [vmem:[%s233_s12] sm:$0x3]  ;;  %v611_v21 = vsel %vm331_vm2, 1.0, %v760_v20  ;;  %v330_v40 = vadd.s32 16, %v328_v9  ;;  %s219_s8 = sand.u32 1, %s733_s15  }
  0x19   : > { %v238_v5 = vld [vmem:[%s229_s5] sm:$0x3]  ;;  %316 = vperm.xlu0 %687, %v307_v4   ;;  %vm338_vm3 = vcmp.ge.s32.totalorder %v329_v10, 12  ;;  %v346_v14 = vmul.u32 6, %v334_v11  ;;  %v428_v22 = vrot.slane %v424_v18, %v427_v15  ;;  %v438_v27 = vrot.slane %v424_v18, %v437_v19  ;;  %s625_s13 = smul.u32 24, %s219_s8 }
  0x1a   : > { %624 = vmatprep.subr.msk.bf16.mxu0 %vm254_vm1, %v238_v5  ;;  %v256_v6 = vsel %vm254_vm1, %v238_v5, 0  ;;  %v341_v12 = vsel %vm338_vm3, 1, %v759_v1  ;;  %v901_v42 = vadd.s32 4294967284, %v330_v40  ;;  %v762_v18 = vmov 19.15   ;;  %s626_s14 = smul.u32 (%p834_p5), 6, %s745_s18 }
  0x1b   : > { %619 = vmatpush3.bf16.msra.mxu0 %v256_v6  ;;  %v344_v13 = vadd.s32 1, %v341_v12  ;;  %v878_v17 = vsub.s32 %v328_v9, %v346_v14  ;;  %v431_v3 = vmul.f32 0.0, %v428_v22  ;;  %s221_s15 = scalar_lea.vmem [#allocation2], %s625_s13 }
  0x1c   : > { %vm357_vm12 = vcmp.eq.s32.totalorder %v901_v42, 4  ;;  %vm366_vm1 = vcmp.eq.s32.totalorder %v901_v42, 5  ;;  %s468_s24 = sadd.s32 (%p834_p5), %s741_s17, %s626_s14 }
  0x1d   : > { %v347_v16 = vmul.u32 6, %v344_v13  ;;  %vm364_vm4 = vcmp.eq.s32.totalorder %v878_v17, 5  ;;  %vm376_vm5 = vcmp.eq.s32.totalorder %v878_v17, 1  ;;  %v395_v24 = vcvt.s32.f32 %v344_v13  ;;  %s612_s25 = sshll.u32 (%p834_p5), %s468_s24, 3 }
  0x1e   : > { %621 = vmatmul.mubr.msk.bf16.vlgmr.msra.gmra.mxu0 %vm247_vm0, %v690_v7  ;;  %v397_v25 = vsel %vm364_vm4, %v611_v21, 0.0  ;;  %v607_v26 = vsel %vm376_vm5, 1.0, %v760_v20  ;;  %vm385_vm7 = vcmp.eq.s32.totalorder %v878_v17, 2  ;;  %vm352_vm10 = vcmp.eq.s32.totalorder %v878_v17, 3  ;;  %s470_s29 = scalar_lea.vmem (%p834_p5), %s983_s4, %s612_s25 }
  0x1f   : > { %v882_v23 = vsub.s32 %v329_v10, %v347_v16  ;;  %v429_v28 = vmul.f32 %v607_v26, %v428_v22  ;;  %v609_v29 = vsel %vm385_vm7, 1.0, %v760_v20  ;;  %vm355_vm11 = vcmp.eq.s32.totalorder %v878_v17, 4 }
  0x20   : > { %v439_v31 = vmul.f32 %v609_v29, %v438_v27  ;;  %vm908_vm13 = vmor %vm352_vm10, %vm355_vm11  ;;  %v399_v5 = vsel %vm366_vm1, 2.0, %v760_v20  ;;  %v441_v7 = vmul.f32 0.0, %v438_v27  ;;  %vm367_vm2 = vcmp.eq.s32.totalorder %v878_v17, 0 }
  0x21   : > { %vm365_vm6 = vcmp.eq.s32.totalorder %v882_v23, 5  ;;  %v432_v30 = vadd.f32 %v429_v28, %v397_v25  ;;  %vm377_vm8 = vcmp.eq.s32.totalorder %v882_v23, 1  ;;  %vm386_vm9 = vcmp.eq.s32.totalorder %v882_v23, 2 }
  0x22   : > { %v398_v32 = vsel %vm365_vm6, %v395_v24, 0.0  ;;  %v608_v33 = vsel %vm377_vm8, 1.0, %v760_v20  ;;  %v610_v36 = vsel %vm386_vm9, 1.0, %v760_v20  ;;  %vm353_vm14 = vcmp.eq.s32.totalorder %v882_v23, 3 }
  0x23   : > { %v895_v34 = vadd.f32 %v439_v31, %v432_v30  ;;  %v430_v35 = vmul.f32 %v608_v33, %v428_v22  ;;  %v440_v38 = vmul.f32 %v610_v36, %v438_v27  ;;  %vm356_vm15 = vcmp.eq.s32.totalorder %v882_v23, 4 }
  0x24   : > { %vm920_vm0 = vmor %vm353_vm14, %vm356_vm15  ;;  %v434_v8 = vadd.f32 %v431_v3, %v399_v5  ;;  %v761_v10 = vmov 32.0   ;;  %vm368_vm3 = vcmp.eq.s32.totalorder %v882_v23, 0  ;;  %v361_v19 = vsel %vm352_vm10, 85.72, %v762_v18 }
  0x25   : > { %v433_v37 = vadd.f32 %v430_v35, %v398_v32  ;;  %v370_v11 = vsel %vm367_vm2, 1.0, %v761_v10  ;;  %v375_v13 = vsel %vm366_vm1, 60.0, %v761_v10  ;;  %v371_v20 = vsel %vm368_vm3, 1.0, %v761_v10 }
  0x26   : > { %v444_v9 = vadd.f32 %v441_v7, %v434_v8  ;;  %v373_v16 = vsel %vm364_vm4, 60.0, %v370_v11  ;;  %v374_v29 = vsel %vm365_vm6, 60.0, %v371_v20  ;;  %v362_v17 = vsel %vm353_vm14, 85.72, %v762_v18 }
  0x27   : > { %v899_v39 = vadd.f32 %v440_v38, %v433_v37 }
  0x90   : > { %v312_v43 = vpop.permute.xlu0 %311 }
  0x91   : > { %v322_v41 = vpop.permute.xlu1 %321 }
  0x94   : > { %v317_v54 = vpop.permute.xlu0 %316 }
  0xde   : > { %v622_v44 = vpop.f32.mrf.mxu0 }
  0xdf   : > { %v326_v45 = vadd.f32 %v622_v44, %v322_v41 }
  0xe0   : > { %v292_v46 = vpop.f32.mrf.mxu0 }
  0xe1   : > { %v402_v47 = vsub.f32 0.0, %v326_v45  ;;  %v324_v48 = vadd.f32 %v312_v43, %v292_v46 }
  0xe2   : > { %v623_v50 = vpop.f32.mrf.mxu0 }
  0xe3   : > { %v411_v51 = vsel %vm357_vm12, %v326_v45, %v402_v47  ;;  %v400_v52 = vsub.f32 0.0, %v324_v48 }
  0xe4   : > { %v416_v53 = vmul.f32 1.442695, %v411_v51  ;;  %v295_v55 = vpop.f32.mrf.mxu0 }
  0xe5   : > { %v409_v56 = vsel %vm908_vm13, %v324_v48, %v400_v52  ;;  %v325_v57 = vadd.f32 %v317_v54, %v295_v55 }
  0xe6   : > { %691 = vpow2.f32 %v416_v53  ;;  %v412_v58 = vmul.f32 1.442695, %v409_v56 }
  0xe7   : > { %v401_v60 = vsub.f32 0.0, %v325_v57 }
  0xe8   : > { %693 = vpow2.f32 %v412_v58 }
  0xe9   : > { %v410_v61 = vsel %vm920_vm0, %v325_v57, %v401_v60 }
  0xea   : > { %v414_v62 = vmul.f32 1.442695, %v410_v61 }
  0xec   : > { %695 = vpow2.f32 %v414_v62 }
  0xf3   : > { %v692_v63 = vpop.eup %691 }
  0xf4   : > { %v420_v0 = vadd.f32 1.0, %v692_v63  ;;  %v447_v21 = vmul.f32 19.15, %v692_v63 }
  0xf5   : > { %v694_v1 = vpop.eup %693 }
  0xf6   : > { %697 = vrcp.f32 %v420_v0  ;;  %v418_v2 = vadd.f32 1.0, %v694_v1  ;;  %v445_v26 = vmul.f32 %v694_v1, %v361_v19 }
  0xf8   : > { %699 = vrcp.f32 %v418_v2 }
  0xf9   : > { %v696_v4 = vpop.eup %695 }
  0xfa   : > { %v419_v6 = vadd.f32 1.0, %v696_v4  ;;  %v446_v32 = vmul.f32 %v696_v4, %v362_v17 }
  0xfc   : > { %701 = vrcp.f32 %v419_v6 }
 0x103   : > { %v698_v12 = vpop.eup %697 }
 0x104   : > { %v450_v14 = vadd.f32 %v698_v12, %v444_v9 }
 0x105   : > { %v700_v15 = vpop.eup %699 }
 0x106   : > { %v453_v22 = vmul.f32 %v450_v14, %v375_v13  ;;  %v448_v24 = vadd.f32 %v700_v15, %v895_v34 }
 0x108   : > { %v456_v25 = vsel %vm357_vm12, %v447_v21, %v453_v22  ;;  %v451_v27 = vmul.f32 %v448_v24, %v373_v16 }
 0x109   : > { %v702_v28 = vpop.eup %701  ;;  %459 = vst [vmem:[%s221_s15 + $0x10] sm:$0x3] %v456_v25 }
 0x10a   : > { %v454_v30 = vsel %vm908_vm13, %v445_v26, %v451_v27  ;;  %v449_v31 = vadd.f32 %v702_v28, %v899_v39 }
 0x10b   : > { %457 = vst [vmem:[%s221_s15] sm:$0xff] %v454_v30  ;;  %466 = sbr.rel (!%p834_p5) target bundleno = 280 (0x118), region = 40 }
 0x10c   : > { %v452_v33 = vmul.f32 %v449_v31, %v374_v29 }
 0x10e   : > { %v455_v34 = vsel %vm920_vm0, %v446_v32, %v452_v33 }
 0x10f   : > { %458 = vst [vmem:[%s221_s15 + $0x8] sm:$0xff] %v455_v34 }
 0x110   : > { %v507_v36 = vld [vmem:[%s221_s15 + $0x10] sm:$0xff] }
 0x111   : > { %508 = vst [vmem:[%s470_s29 + $0x20] sm:$0xff] %v507_v36 }
 0x112   : > { %v503_v23 = vld [vmem:[%s221_s15] sm:$0xff] }
 0x113   : > { %504 = vst [vmem:[%s470_s29] sm:$0xff] %v503_v23 }
 0x116   : > { %v505_v35 = vld [vmem:[%s221_s15 + $0x8] sm:$0xff] }
 0x117   : > { %506 = vst [vmem:[%s470_s29 + $0x10] sm:$0xff] %v505_v35 }
 0x118 PF: > { %s14_s21 = sadd.s32 1, %s757_s21   ;;  %s989_s15 = smov %s737_s16 }
 0x119   : > { %p11_p11 = scmp.ge.s32.totalorder %s14_s21, 6   ;;  %s990_s16 = smov %s845_s30 }
 0x11a   : > { %s991_s17 = smov %s749_s19  ;;  %s992_s18 = smov %s753_s20 }
 0x11b   : > { %s993_s19 = smov %s996_s22  ;;  %s994_s20 = smov %s1000_s23 }
 0x11c   :  { %13 = sbr.rel (!%p11_p11) target bundleno = 4 (0x4), region = 107 }

</bundles_post_ra>
